<compile_context>
chip_gen: v7x
topology: tpu7x:2x2x1
jax: 0.10.0
libtpu: 0.0.40
codegen_flags: <defaults>
</compile_context>

<pallas_src>
import functools

import jax
import jax.numpy as jnp
import numpy as np
from jax.experimental import pallas as pl
from jax.experimental.pallas import tpu as pltpu

# Full-f32 matmuls everywhere (kernel and reference) so results match tightly.
jax.config.update("jax_default_matmul_precision", "highest")

_HIGH = jax.lax.Precision.HIGHEST


def _round_up(x, m):
    return ((x + m - 1) // m) * m


def _propensity_kernel(uvecs_ref, ivecs_ref, labels_ref, mask_ref,
                       w_u_ref, bias_ref, w_big_ref, w_item_ref, sel_ref,
                       score_ref, loss_ref, *, block_b, batch):
    f32 = jnp.float32
    uvecs = uvecs_ref[...].astype(f32)            # (TB, D1)
    ivecs = ivecs_ref[...].astype(f32)            # (TB, N*D2)  lane-dense
    labels = labels_ref[...].astype(f32)          # (TB, N)
    mask = mask_ref[...].astype(f32)              # (TB, N)

    # u[b] = uvecs[b] . w_u + (b_u + b_i)
    u = jnp.dot(uvecs, w_u_ref[...], precision=_HIGH,
                preferred_element_type=f32) + bias_ref[...]            # (TB, 1)
    # w_tiled[b, n*D2+d] = (uvecs @ w_ui.T)[b, d] + w_item[d]
    w_tiled = jnp.dot(uvecs, w_big_ref[...], precision=_HIGH,
                      preferred_element_type=f32) + w_item_ref[...]    # (TB, N*D2)

    # Per-item reduction on the MXU via the constant block-diagonal selector:
    #   score[b, n] = u[b] + sum_d ivecs[b, n, d] * w_tiled[b, n*D2+d]
    prod = ivecs * w_tiled                        # single VPU pass over the big tile
    score = u + jnp.dot(prod, sel_ref[...], precision=_HIGH,
                        preferred_element_type=f32)                    # (TB, N)
    score_ref[...] = score.astype(score_ref.dtype)
    # TODO(synk): for N << 128 this score store is lane-masked; a lane-dense
    # (N, TB) repack is near-free plumbing but score writeback is tiny vs ivecs.

    # Numerically stable BCEWithLogitsLoss(reduction='none'):
    #   l(x, y) = max(x, 0) - x*y + log1p(exp(-|x|))
    bce = (jnp.maximum(score, 0.0) - score * labels
           + jnp.log1p(jnp.exp(-jnp.abs(score))))

    # Ragged last tile: rows >= batch contain garbage reads -> mask them out.
    n = labels.shape[1]
    rows = (jax.lax.broadcasted_iota(jnp.int32, (block_b, n), 0)
            + pl.program_id(0) * block_b)
    row_ok = rows < batch
    mask_eff = jnp.where(row_ok, mask, 0.0)
    bce_eff = jnp.where(row_ok, bce, 0.0)

    num = jnp.sum(bce_eff * mask_eff, axis=1, keepdims=True)    # (TB, 1)
    den = jnp.sum(mask_eff, axis=1, keepdims=True)              # (TB, 1)
    # Rows with zero mask weight (incl. ragged tail rows) contribute 0, not NaN.
    rowloss = jnp.where(den > 0.0, num / jnp.where(den > 0.0, den, 1.0), 0.0)
    loss_ref[...] = jnp.broadcast_to(jnp.sum(rowloss),
                                     (1, 1, 1)).astype(loss_ref.dtype)


def propensity_score_forward(uvecs, ivecs, labels, mask, params, *, block_b=None):
    """Returns (loss, score) exactly like the PyTorch module with compute_loss=True."""
    f32 = jnp.float32
    B, D1 = uvecs.shape
    _, N, D2 = ivecs.shape
    ND = N * D2

    # --- Small host-side parameter prep (the big ivecs tensor is NOT copied) ---
    w_u = params["user_lin_w"].reshape(D1, 1).astype(f32)              # (D1, 1)
    bias = (params["user_lin_b"].reshape(())
            + params["item_lin_b"].reshape(())).astype(f32).reshape(1, 1)
    w_item = params["item_lin_w"].reshape(D2).astype(f32)              # (D2,)
    w_ui = params["user_item_lin_w"].astype(f32)                       # (D2, D1)
    w_big = jnp.tile(w_ui.T, (1, N))                                   # (D1, N*D2)
    w_item_row = jnp.tile(w_item, (N,))[None, :]                       # (1, N*D2)
    # Block-diagonal 0/1 selector: sel[n*D2+d, n] = 1.
    # TODO(synk): for very large N*D2 split this selector matmul over item chunks.
    sel = (jnp.arange(ND, dtype=jnp.int32)[:, None] // D2
           == jnp.arange(N, dtype=jnp.int32)[None, :]).astype(f32)     # (N*D2, N)

    # Free metadata reshape of the contiguous dominant tensor; no pad, no upcast.
    ivecs_flat = ivecs.reshape(B, ND)

    def _isz(x):
        return jnp.dtype(x.dtype).itemsize

    # --- Generation-aware VMEM budget and padded-footprint tile sizing --------
    try:
        vmem_cap = int(pltpu.get_tpu_info().vmem_capacity_bytes)
    except Exception:
        vmem_cap = 64 * 1024 * 1024                  # v7x-safe fallback
    vmem_limit = int(min((vmem_cap * 3) // 4, 96 * 1024 * 1024))

    if block_b is None:
        lane = lambda c: _round_up(c, 128)           # lane-padded VMEM columns
        per_row_io = (lane(ND) * _isz(ivecs) + lane(D1) * _isz(uvecs)
                      + lane(N) * (_isz(labels) + _isz(mask))
                      + lane(N) * 4)                                    # score out
        per_row_tmp = 3 * lane(ND) * 4               # f32 ivecs cast, w_tiled, prod
        budget = (vmem_limit * 3) // 5
        block_b = budget // (2 * per_row_io + per_row_tmp)
        block_b = max(8, (block_b // 8) * 8)
    block_b = max(8, min(int(block_b), _round_up(B, 8)))
    if B >= 16:
        # At least 2 grid steps so both v7x TensorCores stream the batch axis.
        block_b = min(block_b, _round_up(-(-B // 2), 8))
    num_tiles = -(-B // block_b)

    kernel = functools.partial(_propensity_kernel, block_b=block_b, batch=B)

    bytes_accessed = (uvecs.size * _isz(uvecs) + ivecs.size * _isz(ivecs)
                      + labels.size * _isz(labels) + mask.size * _isz(mask)
                      + B * N * 4 + num_tiles * 4)
    cost = pl.CostEstimate(
        flops=int(2 * B * D1 * (1 + ND) + 2 * B * ND * N + 3 * B * ND + 8 * B * N),
        transcendentals=int(2 * B * N),
        bytes_accessed=int(bytes_accessed),
    )

    score, partials = pl.pallas_call(
        kernel,
        out_shape=(
            jax.ShapeDtypeStruct((B, N), f32),
            jax.ShapeDtypeStruct((num_tiles, 1, 1), f32),
        ),
        grid_spec=pltpu.PrefetchScalarGridSpec(
            num_scalar_prefetch=0,
            grid=(num_tiles,),
            in_specs=[
                pl.BlockSpec((block_b, D1), lambda i: (i, 0)),    # uvecs
                pl.BlockSpec((block_b, ND), lambda i: (i, 0)),    # ivecs (lane-dense)
                pl.BlockSpec((block_b, N), lambda i: (i, 0)),     # labels
                pl.BlockSpec((block_b, N), lambda i: (i, 0)),     # mask
                pl.BlockSpec((D1, 1), lambda i: (0, 0)),          # user_lin weight
                pl.BlockSpec((1, 1), lambda i: (0, 0)),           # b_u + b_i
                pl.BlockSpec((D1, ND), lambda i: (0, 0)),         # tiled user_item weight
                pl.BlockSpec((1, ND), lambda i: (0, 0)),          # tiled item_lin weight
                pl.BlockSpec((ND, N), lambda i: (0, 0)),          # block-diag selector
            ],
            out_specs=(
                pl.BlockSpec((block_b, N), lambda i: (i, 0)),     # score
                pl.BlockSpec((1, 1, 1), lambda i: (i, 0, 0)),     # per-tile loss partial
            ),
        ),
        compiler_params=pltpu.CompilerParams(
            dimension_semantics=("parallel",),
            vmem_limit_bytes=vmem_limit,
        ),
        cost_estimate=cost,
    )(uvecs, ivecs_flat, labels, mask, w_u, bias, w_big, w_item_row, sel)

    # Global mean uses the ORIGINAL batch size; ragged-tail rows contribute 0.
    loss = jnp.sum(partials) / B
    return loss, score


def _reference_forward(uvecs, ivecs, labels, mask, params):
    """Plain-JAX reference mirroring the PyTorch forward."""
    u = uvecs @ params["user_lin_w"].T + params["user_lin_b"]          # (B, 1)
    i = jnp.einsum("bnd,kd->bnk", ivecs, params["item_lin_w"])         # (B, N, 1)
    i = i[..., 0] + params["item_lin_b"][0]
    ui = uvecs @ params["user_item_lin_w"].T                           # (B, D2)
    ui = jnp.sum(ui[:, None, :] * ivecs, axis=-1)                      # (B, N)
    score = u + i + ui
    bce = (jnp.maximum(score, 0.0) - score * labels
           + jnp.log1p(jnp.exp(-jnp.abs(score))))
    loss = jnp.mean(jnp.sum(bce * mask, axis=1) / jnp.sum(mask, axis=1))
    return loss, score


if __name__ == "__main__":
    B, N, D1, D2 = 2, 8, 32, 16   # batch, num_news(pos+neg), user_dim, item_dim

    key = jax.random.PRNGKey(0)
    k_u, k_i, k_lab, k_m, k_wu, k_bu, k_wi, k_bi, k_wui = jax.random.split(key, 9)

    uvecs = jax.random.normal(k_u, (B, D1), dtype=jnp.float32)
    ivecs = jax.random.normal(k_i, (B, N, D2), dtype=jnp.float32)
    labels = (jax.random.uniform(k_lab, (B, N)) > 0.5).astype(jnp.float32)
    mask = (jax.random.uniform(k_m, (B, N)) > 0.3).astype(jnp.float32)
    mask = mask.at[:, 0].set(1.0)  # keep per-row mask sum > 0 (matches PyTorch usage)

    # Deterministic parameter init (shapes follow nn.Linear conventions: (out, in)).
    params = {
        "user_lin_w": 0.1 * jax.random.normal(k_wu, (1, D1), dtype=jnp.float32),
        "user_lin_b": 0.05 * jax.random.normal(k_bu, (1,), dtype=jnp.float32),
        "item_lin_w": 0.1 * jax.random.normal(k_wi, (1, D2), dtype=jnp.float32),
        "item_lin_b": 0.05 * jax.random.normal(k_bi, (1,), dtype=jnp.float32),
        "user_item_lin_w": 0.1 * jax.random.normal(k_wui, (D2, D1), dtype=jnp.float32),
    }

    loss, score = propensity_score_forward(uvecs, ivecs, labels, mask, params)
    jax.block_until_ready((loss, score))

    ref_loss, ref_score = _reference_forward(uvecs, ivecs, labels, mask, params)
    np.testing.assert_allclose(np.asarray(score), np.asarray(ref_score), rtol=1e-5, atol=1e-5)
    np.testing.assert_allclose(np.asarray(loss), np.asarray(ref_loss), rtol=1e-5, atol=1e-5)

    print("KERNEL_OK")
</pallas_src>

<mosaic_0001>
module attributes {stable_mosaic.version = 11 : i64} {
  func.func @_propensity_kernel(%arg0: i32, %arg1: memref<8x32xf32, #tpu.memory_space<vmem>>, %arg2: memref<8x128xf32, #tpu.memory_space<vmem>>, %arg3: memref<8x8xf32, #tpu.memory_space<vmem>>, %arg4: memref<8x8xf32, #tpu.memory_space<vmem>>, %arg5: memref<32x1xf32, #tpu.memory_space<vmem>>, %arg6: memref<1x1xf32, #tpu.memory_space<vmem>>, %arg7: memref<32x128xf32, #tpu.memory_space<vmem>>, %arg8: memref<1x128xf32, #tpu.memory_space<vmem>>, %arg9: memref<128x8xf32, #tpu.memory_space<vmem>>, %arg10: memref<8x8xf32, #tpu.memory_space<vmem>>, %arg11: memref<1x1x1xf32, #tpu.memory_space<vmem>>) attributes {dimension_semantics = [#tpu.dimension_semantics<parallel>], iteration_bounds = array<i64: 1>, scalar_prefetch = 0 : i64, scratch_operands = 0 : i64, tpu.core_type = #tpu.core_type<tc>, window_params = [{transform_indices = @transform_0, window_bounds = array<i64: 8, 32>}, {transform_indices = @transform_1, window_bounds = array<i64: 8, 128>}, {transform_indices = @transform_2, window_bounds = array<i64: 8, 8>}, {transform_indices = @transform_3, window_bounds = array<i64: 8, 8>}, {pipeline_mode = #tpu.pipeline_mode<synchronous>, transform_indices = @transform_4, window_bounds = array<i64: 32, 1>}, {pipeline_mode = #tpu.pipeline_mode<synchronous>, transform_indices = @transform_5, window_bounds = array<i64: 1, 1>}, {pipeline_mode = #tpu.pipeline_mode<synchronous>, transform_indices = @transform_6, window_bounds = array<i64: 32, 128>}, {pipeline_mode = #tpu.pipeline_mode<synchronous>, transform_indices = @transform_7, window_bounds = array<i64: 1, 128>}, {pipeline_mode = #tpu.pipeline_mode<synchronous>, transform_indices = @transform_8, window_bounds = array<i64: 128, 8>}, {transform_indices = @transform_9, window_bounds = array<i64: 8, 8>}, {transform_indices = @transform_10, window_bounds = array<i64: 1, 1, 1>}]} {
    %c0 = arith.constant 0 : index
    %c0_0 = arith.constant 0 : index
    %0 = vector.load %arg1[%c0, %c0_0] : memref<8x32xf32, #tpu.memory_space<vmem>>, vector<8x32xf32>
    %c0_1 = arith.constant 0 : index
    %c0_2 = arith.constant 0 : index
    %1 = vector.load %arg2[%c0_1, %c0_2] : memref<8x128xf32, #tpu.memory_space<vmem>>, vector<8x128xf32>
    %c0_3 = arith.constant 0 : index
    %c0_4 = arith.constant 0 : index
    %2 = vector.load %arg3[%c0_3, %c0_4] : memref<8x8xf32, #tpu.memory_space<vmem>>, vector<8x8xf32>
    %c0_5 = arith.constant 0 : index
    %c0_6 = arith.constant 0 : index
    %3 = vector.load %arg4[%c0_5, %c0_6] : memref<8x8xf32, #tpu.memory_space<vmem>>, vector<8x8xf32>
    %c0_7 = arith.constant 0 : index
    %c0_8 = arith.constant 0 : index
    %4 = vector.load %arg5[%c0_7, %c0_8] : memref<32x1xf32, #tpu.memory_space<vmem>>, vector<32x1xf32>
    %cst = arith.constant dense<0.000000e+00> : vector<8x1xf32>
    %5 = tpu.matmul %0, %4, %cst {dimension_numbers = #tpu.dot_dimension_numbers<[1], [0], [0], [1], [0, 0, 1, 1], [], []>, precision = #tpu.contract_precision<fp32>} : vector<8x32xf32>, vector<32x1xf32>, vector<8x1xf32> -> vector<8x1xf32>
    %c0_9 = arith.constant 0 : index
    %c0_10 = arith.constant 0 : index
    %6 = vector.load %arg6[%c0_9, %c0_10] : memref<1x1xf32, #tpu.memory_space<vmem>>, vector<1x1xf32>
    %7 = vector.broadcast %6 : vector<1x1xf32> to vector<8x1xf32>
    %8 = arith.addf %5, %7 : vector<8x1xf32>
    %c0_11 = arith.constant 0 : index
    %c0_12 = arith.constant 0 : index
    %9 = vector.load %arg7[%c0_11, %c0_12] : memref<32x128xf32, #tpu.memory_space<vmem>>, vector<32x128xf32>
    %cst_13 = arith.constant dense<0.000000e+00> : vector<8x128xf32>
    %10 = tpu.matmul %0, %9, %cst_13 {dimension_numbers = #tpu.dot_dimension_numbers<[1], [0], [0], [1], [0, 0, 1, 1], [], []>, precision = #tpu.contract_precision<fp32>} : vector<8x32xf32>, vector<32x128xf32>, vector<8x128xf32> -> vector<8x128xf32>
    %c0_14 = arith.constant 0 : index
    %c0_15 = arith.constant 0 : index
    %11 = vector.load %arg8[%c0_14, %c0_15] : memref<1x128xf32, #tpu.memory_space<vmem>>, vector<1x128xf32>
    %12 = vector.broadcast %11 : vector<1x128xf32> to vector<8x128xf32>
    %13 = arith.addf %10, %12 : vector<8x128xf32>
    %14 = arith.mulf %1, %13 : vector<8x128xf32>
    %c0_16 = arith.constant 0 : index
    %c0_17 = arith.constant 0 : index
    %15 = vector.load %arg9[%c0_16, %c0_17] : memref<128x8xf32, #tpu.memory_space<vmem>>, vector<128x8xf32>
    %cst_18 = arith.constant dense<0.000000e+00> : vector<8x8xf32>
    %16 = tpu.matmul %14, %15, %cst_18 {dimension_numbers = #tpu.dot_dimension_numbers<[1], [0], [0], [1], [0, 0, 1, 1], [], []>, precision = #tpu.contract_precision<fp32>} : vector<8x128xf32>, vector<128x8xf32>, vector<8x8xf32> -> vector<8x8xf32>
    %17 = vector.broadcast %8 : vector<8x1xf32> to vector<8x8xf32>
    %18 = arith.addf %17, %16 : vector<8x8xf32>
    %c0_19 = arith.constant 0 : index
    %c0_20 = arith.constant 0 : index
    %19 = vector.load %arg10[%c0_19, %c0_20] : memref<8x8xf32, #tpu.memory_space<vmem>>, vector<8x8xf32>
    tpu.vector_store %arg10[%c0_19, %c0_20], %18 {strides = array<i32>} : memref<8x8xf32, #tpu.memory_space<vmem>>, vector<8x8xf32>,
    %cst_21 = arith.constant 0.000000e+00 : f32
    %20 = vector.broadcast %cst_21 : f32 to vector<8x8xf32>
    %21 = arith.maximumf %18, %20 : vector<8x8xf32>
    %22 = arith.mulf %18, %2 : vector<8x8xf32>
    %23 = arith.subf %21, %22 : vector<8x8xf32>
    %24 = math.absf %18 : vector<8x8xf32>
    %cst_22 = arith.constant 0.000000e+00 : f32
    %25 = vector.broadcast %cst_22 : f32 to vector<8x8xf32>
    %26 = arith.subf %25, %24 : vector<8x8xf32>
    %27 = math.exp %26 : vector<8x8xf32>
    %28 = math.log1p %27 : vector<8x8xf32>
    %29 = arith.addf %23, %28 : vector<8x8xf32>
    %30 = tpu.iota {dimensions = array<i32: 0>} : vector<8x8xi32>
    %c8_i32 = arith.constant 8 : i32
    %31 = arith.muli %arg0, %c8_i32 : i32
    %32 = vector.broadcast %31 : i32 to vector<8x8xi32>
    %33 = arith.addi %30, %32 : vector<8x8xi32>
    %c2_i32 = arith.constant 2 : i32
    %34 = vector.broadcast %c2_i32 : i32 to vector<8x8xi32>
    %35 = arith.cmpi slt, %33, %34 : vector<8x8xi32>
    %cst_23 = arith.constant 0.000000e+00 : f32
    %36 = vector.broadcast %cst_23 : f32 to vector<8x8xf32>
    %37 = arith.select %35, %3, %36 : vector<8x8xi1>, vector<8x8xf32>
    %cst_24 = arith.constant 0.000000e+00 : f32
    %38 = vector.broadcast %cst_24 : f32 to vector<8x8xf32>
    %39 = arith.select %35, %29, %38 : vector<8x8xi1>, vector<8x8xf32>
    %40 = arith.mulf %39, %37 : vector<8x8xf32>
    %cst_25 = arith.constant dense<0.000000e+00> : vector<8xf32>
    %41 = vector.multi_reduction <add>, %40, %cst_25 [1] : vector<8x8xf32> to vector<8xf32>
    %42 = vector.shape_cast %41 : vector<8xf32> to vector<8x1xf32>
    %cst_26 = arith.constant dense<0.000000e+00> : vector<8xf32>
    %43 = vector.multi_reduction <add>, %37, %cst_26 [1] : vector<8x8xf32> to vector<8xf32>
    %44 = vector.shape_cast %43 : vector<8xf32> to vector<8x1xf32>
    %cst_27 = arith.constant 0.000000e+00 : f32
    %45 = vector.broadcast %cst_27 : f32 to vector<8x1xf32>
    %46 = arith.cmpf ogt, %44, %45 : vector<8x1xf32>
    %cst_28 = arith.constant 0.000000e+00 : f32
    %47 = vector.broadcast %cst_28 : f32 to vector<8x1xf32>
    %48 = arith.cmpf ogt, %44, %47 : vector<8x1xf32>
    %cst_29 = arith.constant 1.000000e+00 : f32
    %49 = vector.broadcast %cst_29 : f32 to vector<8x1xf32>
    %50 = arith.select %48, %44, %49 : vector<8x1xi1>, vector<8x1xf32>
    %51 = arith.divf %42, %50 : vector<8x1xf32>
    %cst_30 = arith.constant 0.000000e+00 : f32
    %52 = vector.broadcast %cst_30 : f32 to vector<8x1xf32>
    %53 = arith.select %46, %51, %52 : vector<8x1xi1>, vector<8x1xf32>
    %54 = vector.shape_cast %53 : vector<8x1xf32> to vector<1x8x1xf32>
    %cst_31 = arith.constant dense<0.000000e+00> : vector<1xf32>
    %55 = vector.multi_reduction <add>, %54, %cst_31 [1, 2] : vector<1x8x1xf32> to vector<1xf32>
    %56 = vector.shape_cast %55 : vector<1xf32> to vector<1x1x1xf32>
    %57 = vector.extract %56[0, 0, 0] : f32 from vector<1x1x1xf32>
    %58 = vector.broadcast %57 : f32 to vector<1x1x1xf32>
    %c0_32 = arith.constant 0 : index
    %c0_33 = arith.constant 0 : index
    %c0_34 = arith.constant 0 : index
    %59 = vector.load %arg11[%c0_32, %c0_33, %c0_34] : memref<1x1x1xf32, #tpu.memory_space<vmem>>, vector<1x1x1xf32>
    tpu.vector_store %arg11[%c0_32, %c0_33, %c0_34], %58 {strides = array<i32>} : memref<1x1x1xf32, #tpu.memory_space<vmem>>, vector<1x1x1xf32>,
    return
  }
  func.func @transform_0(%arg0: i32) -> (i32, i32) {
    %c0_i32 = arith.constant 0 : i32
    %c0_i32_0 = arith.constant 0 : i32
    return %arg0, %c0_i32 : i32, i32
  }
  func.func @transform_1(%arg0: i32) -> (i32, i32) {
    %c0_i32 = arith.constant 0 : i32
    %c0_i32_0 = arith.constant 0 : i32
    return %arg0, %c0_i32 : i32, i32
  }
  func.func @transform_2(%arg0: i32) -> (i32, i32) {
    %c0_i32 = arith.constant 0 : i32
    %c0_i32_0 = arith.constant 0 : i32
    return %arg0, %c0_i32 : i32, i32
  }
  func.func @transform_3(%arg0: i32) -> (i32, i32) {
    %c0_i32 = arith.constant 0 : i32
    %c0_i32_0 = arith.constant 0 : i32
    return %arg0, %c0_i32 : i32, i32
  }
  func.func @transform_4(%arg0: i32) -> (i32, i32) {
    %c0_i32 = arith.constant 0 : i32
    %c0_i32_0 = arith.constant 0 : i32
    %c0_i32_1 = arith.constant 0 : i32
    return %c0_i32, %c0_i32_0 : i32, i32
  }
  func.func @transform_5(%arg0: i32) -> (i32, i32) {
    %c0_i32 = arith.constant 0 : i32
    %c0_i32_0 = arith.constant 0 : i32
    %c0_i32_1 = arith.constant 0 : i32
    return %c0_i32, %c0_i32_0 : i32, i32
  }
  func.func @transform_6(%arg0: i32) -> (i32, i32) {
    %c0_i32 = arith.constant 0 : i32
    %c0_i32_0 = arith.constant 0 : i32
    %c0_i32_1 = arith.constant 0 : i32
    return %c0_i32, %c0_i32_0 : i32, i32
  }
  func.func @transform_7(%arg0: i32) -> (i32, i32) {
    %c0_i32 = arith.constant 0 : i32
    %c0_i32_0 = arith.constant 0 : i32
    %c0_i32_1 = arith.constant 0 : i32
    return %c0_i32, %c0_i32_0 : i32, i32
  }
  func.func @transform_8(%arg0: i32) -> (i32, i32) {
    %c0_i32 = arith.constant 0 : i32
    %c0_i32_0 = arith.constant 0 : i32
    %c0_i32_1 = arith.constant 0 : i32
    return %c0_i32, %c0_i32_0 : i32, i32
  }
  func.func @transform_9(%arg0: i32) -> (i32, i32) {
    %c0_i32 = arith.constant 0 : i32
    %c0_i32_0 = arith.constant 0 : i32
    return %arg0, %c0_i32 : i32, i32
  }
  func.func @transform_10(%arg0: i32) -> (i32, i32, i32) {
    %c0_i32 = arith.constant 0 : i32
    %c0_i32_0 = arith.constant 0 : i32
    %c0_i32_1 = arith.constant 0 : i32
    return %arg0, %c0_i32, %c0_i32_0 : i32, i32, i32
  }
}

</mosaic_0001>

<bundles_post_ra>
// kernel: tpu_custom_call.1
= control target key start
LH: loop header
LB: loop body
LE: loop exit
PB: predicated region body
PF: predicated region fallthrough
CT: control target
= control target key end

     0   :  { %s3301_s0 = inlined_call_operand.vmem [shape: f32[2,32], index: 0, kind: input, shape index: {}]   ;;  %s3302_s1 = inlined_call_operand.vmem [shape: f32[2,128], index: 1, kind: input, shape index: {}]   ;;  %s3303_s2 = inlined_call_operand.vmem [shape: f32[2,8], index: 2, kind: input, shape index: {}]   ;;  %s3304_s3 = inlined_call_operand.vmem [shape: f32[2,8], index: 3, kind: input, shape index: {}]   ;;  %s3305_s4 = inlined_call_operand.vmem [shape: f32[32,1], index: 4, kind: input, shape index: {}]   ;;  %s3306_s5 = inlined_call_operand.<no memory space> [shape: f32[1,1], index: 5, kind: input, shape index: {}]   ;;  %s3307_s6 = inlined_call_operand.vmem [shape: f32[32,128], index: 6, kind: input, shape index: {}]   ;;  %s3308_s7 = inlined_call_operand.vmem [shape: f32[1,128], index: 7, kind: input, shape index: {}]   ;;  %s3309_s8 = inlined_call_operand.vmem [shape: f32[128,8], index: 8, kind: input, shape index: {}]   ;;  %s3310_s9 = inlined_call_operand.hbm [shape: f32[2,8], index: 9, kind: output, shape index: {0}]   ;;  %s3311_s10 = inlined_call_operand.hbm [shape: f32[1,1,1], index: 10, kind: output, shape index: {1}]  }
   0x1   :  { %v16_v0 = vstv %s3306_s5 }
   0x2   :  { %17 = vst [vmem:[#allocation2] sm:$0x1] %v16_v0 }
   0x3   :  { %18 = vsyncpa [#allocation4], 0  ;;  %v542_v1 = vld [vmem:[%s3307_s6] sm:$0xff]  ;;  %v543_v2 = vld [vmem:[%s3307_s6 + $0x8] sm:$0xff]  ;;  %v2594_v4 = vmov 0.0|0.0   ;;  %vm2595_vm0 = vmmov 0  }
   0x4   :  { %v544_v3 = vld [vmem:[%s3307_s6 + $0x10] sm:$0xff]  ;;  %2327 = vmatprep.subr.bf16.mxu1 %v2594_v4  ;;  %v554_v5 = vand.u32 4294901760, %v542_v1  ;;  %v557_v6 = vand.u32 4294901760, %v543_v2  ;;  %v545_v7 = vld [vmem:[%s3307_s6 + $0x18] sm:$0xff]  ;;  %v2596_v9 = vmov 0.0   ;;  %v38_v10 = vld [vmem:[%s3301_s0] sm:$0xff] }
   0x5   :  { %v560_v8 = vand.u32 4294901760, %v544_v3  ;;  %2023 = vmatprep.mubr.msk.f32.mxu1 %vm2595_vm0, %v2596_v9  ;;  %vm53_vm1 = vcmask 261120   ;;  %v563_v11 = vand.u32 4294901760, %v545_v7 }
   0x6   :  { %v55_v12 = vsel %vm53_vm1, %v38_v10, 0 }
   0x7   :  { %19 = vsyncpa [#allocation6], 0  ;;  %2291 = vmatprep.subr.bf16.mxu0 %v2594_v4  ;;  %v42_v13 = vld [vmem:[%s3305_s4] sm:$0xff]  ;;  %1957 = vmatprep.mubr.msk.f32.mxu0 %vm2595_vm0, %v2596_v9  ;;  %v2684_v14 = vpack.c.bf16 %v557_v6, %v554_v5  ;;  %v2686_v15 = vsub.f32 %v542_v1, %v554_v5  ;;  %v2688_v16 = vsub.f32 %v543_v2, %v557_v6  ;;  %v43_v18 = vld [vmem:[%s3305_s4 + $0x8] sm:$0xff]  ;;  %v2697_v20 = vand.u32 4294901760, %v55_v12 }
   0x8   :  { %v2690_v17 = vsub.f32 %v544_v3, %v560_v8  ;;  %v2695_v19 = vsub.f32 %v545_v7, %v563_v11  ;;  %v58_v21 = vand.u32 4294901760, %v42_v13  ;;  %v2700_v22 = vpack.c.bf16 %v563_v11, %v560_v8  ;;  %v44_v32 = vld [vmem:[%s3305_s4 + $0x10] sm:$0xff]  ;;  %v45_v36 = vld [vmem:[%s3305_s4 + $0x18] sm:$0xff]  ;;  %v2792_v7 = vld [vmem:[%s3309_s8] sm:$0xff] }
   0x9   :  { %2329 = vmatpush3.bf16.msra.mxu1 %v2684_v14  ;;  %v635_v23 = vand.u32 4294901760, %v2686_v15  ;;  %v642_v24 = vand.u32 4294901760, %v2688_v16  ;;  %v2707_v26 = vsub.f32 %v55_v12, %v2697_v20  ;;  %v61_v28 = vand.u32 4294901760, %v43_v18  ;;  %v2797_v8 = vld [vmem:[%s3309_s8 + $0x8] sm:$0xff]  ;;  %v2806_v10 = vld [vmem:[%s3309_s8 + $0x10] sm:$0xff]  ;;  %v2811_v11 = vld [vmem:[%s3309_s8 + $0x18] sm:$0xff] }
   0xa   :  { %v649_v25 = vand.u32 4294901760, %v2690_v17  ;;  %2330 = vmatprep.subr.bf16.mxu1 %v2594_v4  ;;  %v656_v27 = vand.u32 4294901760, %v2695_v19  ;;  %v2734_v39 = vsub.f32 %v42_v13, %v58_v21  ;;  %v64_v43 = vand.u32 4294901760, %v44_v32 }
   0xb   :  { %v636_v29 = vsub.f32 %v2686_v15, %v635_v23  ;;  %v643_v30 = vsub.f32 %v2688_v16, %v642_v24  ;;  %v2723_v33 = vand.u32 4294901760, %v2707_v26  ;;  %v2728_v35 = vpack.c.bf16 %v61_v28, %v58_v21 }
   0xc   :  { %v650_v31 = vsub.f32 %v2690_v17, %v649_v25  ;;  %v657_v34 = vsub.f32 %v2695_v19, %v656_v27  ;;  %v2740_v42 = vsub.f32 %v43_v18, %v61_v28  ;;  %v67_v46 = vand.u32 4294901760, %v45_v36  ;;  %v2825_v28 = vld [vmem:[%s3309_s8 + $0x20] sm:$0xff] }
   0xd   :  { %2332 = vmatpush3.bf16.msra.mxu1 %v2700_v22  ;;  %v637_v37 = vand.u32 4294901760, %v636_v29  ;;  %v644_v38 = vand.u32 4294901760, %v643_v30  ;;  %v129_v40 = vsub.f32 %v2707_v26, %v2723_v33  ;;  %2293 = vmatpush3.bf16.msra.mxu0 %v2728_v35  ;;  %v139_v47 = vand.u32 4294901760, %v2734_v39  ;;  %v2830_v29 = vld [vmem:[%s3309_s8 + $0x28] sm:$0xff] }
   0xe   :  { %2333 = vmatprep.subr.bf16.mxu1 %v2594_v4  ;;  %v651_v41 = vand.u32 4294901760, %v650_v31  ;;  %v658_v45 = vand.u32 4294901760, %v657_v34  ;;  %2294 = vmatprep.subr.bf16.mxu0 %v2594_v4  ;;  %v2744_v49 = vsub.f32 %v44_v32, %v64_v43  ;;  %v146_v50 = vand.u32 4294901760, %v2740_v42 }
   0xf   :  { %v2334_v44 = vpack.c.bf16 %v644_v38, %v637_v37  ;;  %v130_v48 = vand.u32 4294901760, %v129_v40  ;;  %v2747_v51 = vpack.c.bf16 %v67_v46, %v64_v43  ;;  %v2749_v52 = vsub.f32 %v45_v36, %v67_v46  ;;  %v2877_v37 = vld [vmem:[%s3309_s8 + $0x30] sm:$0xff]  ;;  %v2882_v38 = vld [vmem:[%s3309_s8 + $0x38] sm:$0xff] }
  0x10   :  { %v140_v53 = vsub.f32 %v2734_v39, %v139_v47  ;;  %v147_v54 = vsub.f32 %v2740_v42, %v146_v50  ;;  %v153_v55 = vand.u32 4294901760, %v2744_v49  ;;  %v2337_v56 = vpack.c.bf16 %v658_v45, %v651_v41  ;;  %v2920_v45 = vld [vmem:[%s3309_s8 + $0x48] sm:$0xff] }
  0x11   :  { %2024 = vmatmul.mubr.f32.vlgmr.msra.gmra.mrb[0].mxu1 %v130_v48  ;;  %v160_v58 = vand.u32 4294901760, %v2749_v52  ;;  %2296 = vmatpush3.bf16.msra.mxu0 %v2747_v51  ;;  %v2340_v0 = vpack.c.bf16 %v2688_v16, %v2686_v15  ;;  %v2343_v3 = vpack.c.bf16 %v2695_v19, %v2690_v17  ;;  %v2304_v5 = vpack.c.bf16 %v2740_v42, %v2734_v39 }
  0x12   :  { %2335 = vmatpush3.bf16.msra.mxu1 %v2334_v44  ;;  %2034 = vmatprep.mubr.msk.f32.mxu1 %vm2595_vm0, %v2596_v9  ;;  %v141_v57 = vand.u32 4294901760, %v140_v53  ;;  %v148_v59 = vand.u32 4294901760, %v147_v54  ;;  %v154_v60 = vsub.f32 %v2744_v49, %v153_v55  ;;  %v2307_v6 = vpack.c.bf16 %v2749_v52, %v2744_v49  ;;  %v2915_v44 = vld [vmem:[%s3309_s8 + $0x40] sm:$0xff] }
  0x13   :  { %2336 = vmatprep.subr.bf16.mxu1 %v2594_v4  ;;  %2297 = vmatprep.subr.bf16.mxu0 %v2594_v4  ;;  %v161_v61 = vsub.f32 %v2749_v52, %v160_v58  ;;  %v1056_v12 = vand.u32 4294901760, %v2792_v7  ;;  %v1059_v13 = vand.u32 4294901760, %v2797_v8  ;;  %v1062_v18 = vand.u32 4294901760, %v2806_v10 }
  0x14   :  { %v2298_v62 = vpack.c.bf16 %v148_v59, %v141_v57  ;;  %v155_v63 = vand.u32 4294901760, %v154_v60  ;;  %1958 = vmatmul.mubr.f32.vlgmr.msra.gmra.mrb[0].mxu0 %v130_v48  ;;  %v1065_v21 = vand.u32 4294901760, %v2811_v11  ;;  %v2352_v30 = vpack.c.bf16 %v642_v24, %v635_v23  ;;  %v2958_v57 = vld [vmem:[%s3309_s8 + $0x50] sm:$0xff] }
  0x15   :  { %v162_v1 = vand.u32 4294901760, %v161_v61  ;;  %1968 = vmatprep.mubr.msk.f32.mxu0 %vm2595_vm0, %v2596_v9  ;;  %v2841_v31 = vsub.f32 %v2792_v7, %v1056_v12  ;;  %v2846_v32 = vsub.f32 %v2797_v8, %v1059_v13  ;;  %v2856_v15 = vsub.f32 %v2806_v10, %v1062_v18 }
  0x16   :  { %2338 = vmatpush3.bf16.msra.mxu1 %v2337_v56  ;;  %2299 = vmatpush3.bf16.msra.mxu0 %v2298_v62  ;;  %v2861_v16 = vsub.f32 %v2811_v11, %v1065_v21  ;;  %v1068_v23 = vand.u32 4294901760, %v2825_v28  ;;  %v1071_v24 = vand.u32 4294901760, %v2830_v29  ;;  %v2316_v17 = vpack.c.bf16 %v146_v50, %v139_v47 }
  0x17   :  { %2339 = vmatprep.subr.bf16.mxu1 %v2594_v4  ;;  %2300 = vmatprep.subr.bf16.mxu0 %v2594_v4  ;;  %v2301_v2 = vpack.c.bf16 %v162_v1, %v155_v63  ;;  %v1149_v34 = vand.u32 4294901760, %v2841_v31  ;;  %v1156_v36 = vand.u32 4294901760, %v2846_v32  ;;  %v1163_v19 = vand.u32 4294901760, %v2856_v15 }
  0x18   :  { %v2901_v40 = vsub.f32 %v2830_v29, %v1071_v24  ;;  %v1074_v39 = vand.u32 4294901760, %v2877_v37  ;;  %v1077_v41 = vand.u32 4294901760, %v2882_v38  ;;  %v1080_v53 = vand.u32 4294901760, %v2915_v44 }
  0x19   :  { %2035 = vmatmul.mubr.f32.vlgmr.msra.gmra.mrb[0].mxu1 %v2697_v20  ;;  %v1150_v42 = vsub.f32 %v2841_v31, %v1149_v34  ;;  %v1157_v43 = vsub.f32 %v2846_v32, %v1156_v36  ;;  %v1164_v46 = vsub.f32 %v2856_v15, %v1163_v19  ;;  %v1083_v54 = vand.u32 4294901760, %v2920_v45 }
  0x1a   :  { %2341 = vmatpush3.bf16.msra.mxu1 %v2340_v0  ;;  %2045 = vmatprep.mubr.msk.f32.mxu1 %vm2595_vm0, %v2596_v9  ;;  %v1184_v49 = vand.u32 4294901760, %v2901_v40  ;;  %v2942_v50 = vsub.f32 %v2877_v37, %v1074_v39  ;;  %v2947_v52 = vsub.f32 %v2882_v38, %v1077_v41  ;;  %v2977_v0 = vsub.f32 %v2915_v44, %v1080_v53  ;;  %v1053_v38 = vld [vmem:[%s3309_s8 + $0x70] sm:$0xff] }
  0x1b   :  { %2342 = vmatprep.subr.bf16.mxu1 %v2594_v4  ;;  %2302 = vmatpush3.bf16.msra.mxu0 %v2301_v2  ;;  %v1158_v56 = vand.u32 4294901760, %v1157_v43  ;;  %v2982_v1 = vsub.f32 %v2920_v45, %v1083_v54  ;;  %vm1702_vm3 = vcmask 64512   ;;  %vm1741_vm6 = vcmask 7168  }
  0x1c   :  { %2303 = vmatprep.subr.bf16.mxu0 %v2594_v4  ;;  %v1185_v61 = vsub.f32 %v2901_v40, %v1184_v49  ;;  %v1191_v62 = vand.u32 4294901760, %v2942_v50  ;;  %v1198_v63 = vand.u32 4294901760, %v2947_v52  ;;  %v1205_v43 = vand.u32 4294901760, %v2977_v0 }
  0x1d   :  { %vm1753_vm7 = vcmask 0  }
  0x1e   :  { %2344 = vmatpush3.bf16.msra.mxu1 %v2343_v3  ;;  %1969 = vmatmul.mubr.f32.vlgmr.msra.gmra.mrb[0].mxu0 %v2697_v20  ;;  %v1086_v3 = vand.u32 4294901760, %v2958_v57 }
  0x1f   :  { %2345 = vmatprep.subr.bf16.mxu1 %v2594_v4  ;;  %2305 = vmatpush3.bf16.msra.mxu0 %v2304_v5 }
  0x20   :  { %2306 = vmatprep.subr.bf16.mxu0 %v2594_v4  ;;  %1979 = vmatprep.mubr.msk.f32.mxu0 %vm2595_vm0, %v2596_v9 }
  0x21   :  { %2046 = vmatmul.mubr.f32.vlgmr.msra.gmra.mrb[0].mxu1 %v2707_v26 }
  0x22   :  { %2347 = vmatpush3.bf16.msra.mxu1 %v2684_v14  ;;  %2056 = vmatprep.mubr.msk.f32.mxu1 %vm2595_vm0, %v2596_v9 }
  0x23   :  { %2348 = vmatprep.subr.bf16.mxu1 %v2594_v4  ;;  %2308 = vmatpush3.bf16.msra.mxu0 %v2307_v6  ;;  %v2994_v6 = vld [vmem:[%s3309_s8 + $0x60] sm:$0xff] }
  0x24   :  { %2309 = vmatprep.subr.bf16.mxu0 %v2594_v4 }
  0x26   :  { %2350 = vmatpush3.bf16.msra.mxu1 %v2700_v22  ;;  %1980 = vmatmul.mubr.f32.vlgmr.msra.gmra.mrb[0].mxu0 %v2707_v26  ;;  %v2355_v26 = vpack.c.bf16 %v656_v27, %v649_v25  ;;  %v1170_v25 = vand.u32 4294901760, %v2861_v16  ;;  %v2896_v27 = vsub.f32 %v2825_v28, %v1068_v23  ;;  %v3094_v28 = vpack.c.bf16 %v1077_v41, %v1074_v39  ;;  %v1054_v39 = vld [vmem:[%s3309_s8 + $0x78] sm:$0xff] }
  0x27   :  { %2351 = vmatprep.subr.bf16.mxu1 %v2594_v4  ;;  %2311 = vmatpush3.bf16.msra.mxu0 %v2728_v35  ;;  %v1098_v41 = vand.u32 4294901760, %v1053_v38  ;;  %v1101_v44 = vand.u32 4294901760, %v1054_v39 }
  0x28   :  { %2312 = vmatprep.subr.bf16.mxu0 %v2594_v4  ;;  %1990 = vmatprep.mubr.msk.f32.mxu0 %vm2595_vm0, %v2596_v9  ;;  %v1171_v47 = vsub.f32 %v2861_v16, %v1170_v25  ;;  %v1177_v48 = vand.u32 4294901760, %v2896_v27 }
  0x29   :  { %2057 = vmatmul.mubr.f32.vlgmr.msra.gmra.mrb[0].mxu1 %v2723_v33  ;;  %v3116_v45 = vsub.f32 %v1053_v38, %v1098_v41 }
  0x2a   :  { %2353 = vmatpush3.bf16.msra.mxu1 %v2352_v30  ;;  %2067 = vmatprep.mubr.msk.f32.mxu1 %vm2595_vm0, %v2596_v9  ;;  %v1172_v59 = vand.u32 4294901760, %v1171_v47  ;;  %v1178_v60 = vsub.f32 %v2896_v27, %v1177_v48 }
  0x2b   :  { %2354 = vmatprep.subr.bf16.mxu1 %v2594_v4  ;;  %2314 = vmatpush3.bf16.msra.mxu0 %v2747_v51 }
  0x2c   :  { %2315 = vmatprep.subr.bf16.mxu0 %v2594_v4 }
  0x2e   :  { %2356 = vmatpush3.bf16.msra.mxu1 %v2355_v26  ;;  %1991 = vmatmul.mubr.f32.vlgmr.msra.gmra.mrb[0].mxu0 %v2723_v33  ;;  %v2319_v33 = vpack.c.bf16 %v160_v58, %v153_v55  ;;  %v1151_v55 = vand.u32 4294901760, %v1150_v42  ;;  %v2963_v58 = vld [vmem:[%s3309_s8 + $0x58] sm:$0xff]  ;;  %v1179_v26 = vand.u32 4294901760, %v1178_v60  ;;  %v1199_v42 = vsub.f32 %v2947_v52, %v1198_v63 }
  0x2f   :  { %2357 = vmatprep.subr.bf16.mxu1 %v2594_v4  ;;  %2317 = vmatpush3.bf16.msra.mxu0 %v2316_v17  ;;  %v1089_v5 = vand.u32 4294901760, %v2963_v58  ;;  %v1192_v17 = vsub.f32 %v2942_v50, %v1191_v62 }
  0x30   :  { %2318 = vmatprep.subr.bf16.mxu0 %v2594_v4  ;;  %2001 = vmatprep.mubr.msk.f32.mxu0 %vm2595_vm0, %v2596_v9  ;;  %v2388_v2 = vpack.c.bf16 %v1158_v56, %v1151_v55  ;;  %v1092_v55 = vand.u32 4294901760, %v2994_v6 }
  0x31   :  { %2068 = vmatmul.mubr.f32.vlgmr.msra.gmra.mrb[0].mxu1 %v2697_v20  ;;  %v3020_v47 = vsub.f32 %v2963_v58, %v1089_v5  ;;  %v1193_v60 = vand.u32 4294901760, %v1192_v17 }
  0x32   :  { %2359 = vmatpush3.bf16.msra.mxu1 %v2684_v14  ;;  %2078 = vmatprep.mubr.msk.f32.mxu1 %vm2595_vm0, %v2596_v9  ;;  %v1165_v14 = vand.u32 4294901760, %v1164_v46  ;;  %v3015_v46 = vsub.f32 %v2958_v57, %v1086_v3  ;;  %v3145_v57 = vpack.c.bf16 %v1101_v44, %v1098_v41 }
  0x33   :  { %2360 = vmatprep.subr.bf16.mxu1 %v2594_v4  ;;  %2320 = vmatpush3.bf16.msra.mxu0 %v2319_v33  ;;  %v1212_v33 = vand.u32 4294901760, %v2982_v1  ;;  %v1226_v8 = vand.u32 4294901760, %v3020_v47 }
  0x34   :  { %2321 = vmatprep.subr.bf16.mxu0 %v2594_v4  ;;  %v2391_v30 = vpack.c.bf16 %v1172_v59, %v1165_v14  ;;  %v3032_v14 = vpack.c.bf16 %v1059_v13, %v1056_v12  ;;  %v1219_v7 = vand.u32 4294901760, %v3015_v46  ;;  %v3047_v12 = vsub.f32 %v2994_v6, %v1092_v55  ;;  %v39_v6 = vld [vmem:[%s3302_s1] sm:$0xff] }
  0x35   :  { %v1227_v10 = vsub.f32 %v3020_v47, %v1226_v8 }
  0x36   :  { %2362 = vmatpush3.bf16.msra.mxu1 %v2700_v22  ;;  %2002 = vmatmul.mubr.f32.vlgmr.msra.gmra.mrb[0].mxu0 %v2697_v20  ;;  %v2999_v22 = vld [vmem:[%s3309_s8 + $0x68] sm:$0xff]  ;;  %v1220_v17 = vsub.f32 %v3015_v46, %v1219_v7  ;;  %v1233_v11 = vand.u32 4294901760, %v3047_v12 }
  0x37   :  { %2323 = vmatpush3.bf16.msra.mxu0 %v2728_v35  ;;  %2012 = vmatprep.mubr.msk.f32.mxu0 %vm2595_vm0, %v2596_v9  ;;  %v1186_v35 = vand.u32 4294901760, %v1185_v61  ;;  %v1095_v56 = vand.u32 4294901760, %v2999_v22  ;;  %v1200_v61 = vand.u32 4294901760, %v1199_v42 }
  0x38   :  { %2324 = vmatprep.subr.bf16.mxu0 %v2594_v4  ;;  %2387 = vmatprep.subr.bf16.mxu1 %v2594_v4 }
  0x39   :  { %2079 = vmatmul.mubr.f32.vlgmr.msra.gmra.mrb[0].mxu1 %v2697_v20  ;;  %v2394_v59 = vpack.c.bf16 %v1186_v35, %v1179_v26  ;;  %v3052_v13 = vsub.f32 %v2999_v22, %v1095_v56 }
  0x3a   :  { %2389 = vmatpush3.bf16.msra.mxu1 %v2388_v2  ;;  %2148 = vmatprep.mubr.msk.f32.mxu1 %vm2595_vm0, %v2596_v9  ;;  %v1206_v2 = vsub.f32 %v2977_v0, %v1205_v43 }
  0x3b   :  { %2326 = vmatpush3.bf16.msra.mxu0 %v2747_v51  ;;  %2390 = vmatprep.subr.bf16.mxu1 %v2594_v4  ;;  %v1213_v51 = vsub.f32 %v2982_v1, %v1212_v33 }
  0x3c   :  { %2363 = vmatprep.subr.bf16.mxu0 %v2594_v4  ;;  %v1207_v26 = vand.u32 4294901760, %v1206_v2 }
  0x3d   :  { %v1214_v35 = vand.u32 4294901760, %v1213_v51  ;;  %v3103_v51 = vpack.c.bf16 %v1083_v54, %v1080_v53  ;;  %v3118_v53 = vsub.f32 %v1054_v39, %v1101_v44  ;;  %v1247_v54 = vand.u32 4294901760, %v3116_v45 }
  0x3e   :  { %2013 = vmatmul.mubr.f32.vlgmr.msra.gmra.mrb[0].mxu0 %v2697_v20  ;;  %2392 = vmatpush3.bf16.msra.mxu1 %v2391_v30  ;;  %v3060_v20 = vpack.c.bf16 %v1065_v21, %v1062_v18  ;;  %v2397_v30 = vpack.c.bf16 %v1200_v61, %v1193_v60  ;;  %v1240_v18 = vand.u32 4294901760, %v3052_v13  ;;  %v3079_v21 = vpack.c.bf16 %v1071_v24, %v1068_v23 }
  0x3f   :  { %2393 = vmatprep.subr.bf16.mxu1 %v2594_v4  ;;  %2365 = vmatpush3.bf16.msra.mxu0 %v3032_v14  ;;  %v2400_v42 = vpack.c.bf16 %v1214_v35, %v1207_v26  ;;  %v1228_v60 = vand.u32 4294901760, %v1227_v10  ;;  %v1234_v61 = vsub.f32 %v3047_v12, %v1233_v11  ;;  %v1248_v26 = vsub.f32 %v3116_v45, %v1247_v54 }
  0x40   :  { %2366 = vmatprep.subr.bf16.mxu0 %v2594_v4  ;;  %2113 = vmatprep.mubr.msk.f32.mxu0 %vm2595_vm0, %v2596_v9  ;;  %v1241_v2 = vsub.f32 %v3052_v13, %v1240_v18  ;;  %v2433_v58 = vpack.c.bf16 %v3118_v53, %v3116_v45  ;;  %v2412_v44 = vpack.c.bf16 %v2846_v32, %v2841_v31 }
  0x41   :  { %v1235_v23 = vand.u32 4294901760, %v1234_v61  ;;  %v2466_v31 = vpack.c.bf16 %v1184_v49, %v1177_v48  ;;  %v2472_v32 = vpack.c.bf16 %v1212_v33, %v1205_v43 }
  0x42   :  { %2395 = vmatpush3.bf16.msra.mxu1 %v2394_v59  ;;  %v1221_v59 = vand.u32 4294901760, %v1220_v17  ;;  %v1242_v24 = vand.u32 4294901760, %v1241_v2  ;;  %v1249_v17 = vand.u32 4294901760, %v1248_v26  ;;  %v1785_v2 = vld [vmem:[#allocation2] ss:$0 sm:$0xff] }
  0x43   :  { %2396 = vmatprep.subr.bf16.mxu1 %v2594_v4  ;;  %2368 = vmatpush3.bf16.msra.mxu0 %v3060_v20 }
  0x44   :  { %2369 = vmatprep.subr.bf16.mxu0 %v2594_v4  ;;  %v2403_v29 = vpack.c.bf16 %v1228_v60, %v1221_v59  ;;  %v2406_v37 = vpack.c.bf16 %v1242_v24, %v1235_v23  ;;  %v3141_v60 = vpack.c.bf16 %v1095_v56, %v1092_v55 }
  0x46   :  { %2398 = vmatpush3.bf16.msra.mxu1 %v2397_v30  ;;  %v1254_v30 = vand.u32 4294901760, %v3118_v53 }
  0x47   :  { %2399 = vmatprep.subr.bf16.mxu1 %v2594_v4  ;;  %2371 = vmatpush3.bf16.msra.mxu0 %v3079_v21 }
  0x48   :  { %2372 = vmatprep.subr.bf16.mxu0 %v2594_v4  ;;  %v1255_v35 = vsub.f32 %v3118_v53, %v1254_v30 }
  0x4a   :  { %2401 = vmatpush3.bf16.msra.mxu1 %v2400_v42  ;;  %v1256_v10 = vand.u32 4294901760, %v1255_v35  ;;  %v3132_v42 = vpack.c.bf16 %v1089_v5, %v1086_v3  ;;  %v2597_v3 = vmov 0   ;;  %v1786_v5 = vld [vmem:[%s3308_s7] ss:$0 sm:$0xff]  ;;  %v2415_v35 = vpack.c.bf16 %v2861_v16, %v2856_v15 }
  0x4b   :  { %2402 = vmatprep.subr.bf16.mxu1 %v2594_v4  ;;  %2374 = vmatpush3.bf16.msra.mxu0 %v3094_v28  ;;  %v2475_v15 = vpack.c.bf16 %v1226_v8, %v1219_v7  ;;  %v2478_v16 = vpack.c.bf16 %v1240_v18, %v1233_v11 }
  0x4c   :  { %2375 = vmatprep.subr.bf16.mxu0 %v2594_v4  ;;  %v2409_v59 = vpack.c.bf16 %v1256_v10, %v1249_v17  ;;  %2539 = vset.pattern.permute.xlu0 %v2597_v3  ;;  %v2418_v17 = vpack.c.bf16 %v2901_v40, %v2896_v27  ;;  %v2421_v10 = vpack.c.bf16 %v2947_v52, %v2942_v50 }
  0x4d   :  { %v2427_v3 = vpack.c.bf16 %v3020_v47, %v3015_v46 }
  0x4e   :  { %2404 = vmatpush3.bf16.msra.mxu1 %v2403_v29 }
  0x4f   :  { %2405 = vmatprep.subr.bf16.mxu1 %v2594_v4  ;;  %2377 = vmatpush3.bf16.msra.mxu0 %v3103_v51 }
  0x50   :  { %2378 = vmatprep.subr.bf16.mxu0 %v2594_v4 }
  0x52   :  { %2407 = vmatpush3.bf16.msra.mxu1 %v2406_v37 }
  0x53   :  { %2408 = vmatprep.subr.bf16.mxu1 %v2594_v4  ;;  %2380 = vmatpush3.bf16.msra.mxu0 %v3132_v42 }
  0x54   :  { %2381 = vmatprep.subr.bf16.mxu0 %v2594_v4 }
  0x56   :  { %2410 = vmatpush3.bf16.msra.mxu1 %v2409_v59  ;;  %v2424_v59 = vpack.c.bf16 %v2982_v1, %v2977_v0 }
  0x57   :  { %2435 = vmatprep.subr.bf16.mxu1 %v2594_v4  ;;  %2383 = vmatpush3.bf16.msra.mxu0 %v3141_v60 }
  0x58   :  { %2384 = vmatprep.subr.bf16.mxu0 %v2594_v4 }
  0x5b   :  { %2386 = vmatpush3.bf16.msra.mxu0 %v3145_v57 }
  0x5c   :  { %2411 = vmatprep.subr.bf16.mxu0 %v2594_v4 }
 0x10c   :  { %v1034_v22 = vpop.f32.mrb[0].mxu1 }
 0x10d   :  { %v2508_v55 = vadd.f32 %v1786_v5, %v1034_v22  ;;  %v2080_v56 = vpop.f32.mrb[1].mxu1  ;;  %v2430_v5 = vpack.c.bf16 %v3052_v13, %v3047_v12 }
 0x10f   :  { %v1038_v61 = vmul.f32 %v2508_v55, %v39_v6  ;;  %v2460_v6 = vpack.c.bf16 %v1156_v36, %v1149_v34  ;;  %v2481_v34 = vpack.c.bf16 %v1254_v30, %v1247_v54  ;;  %v1721_v36 = vlaneseq  ;;  %v40_v54 = vld [vmem:[%s3303_s2] sm:$0xff] }
 0x111   :  { %v3157_v29 = vand.u32 4294901760, %v1038_v61  ;;  %v538_v23 = vpop.f32.mrb[0].mxu0 }
 0x112   :  { %v2507_v24 = vadd.f32 %v1785_v2, %v538_v23  ;;  %v2014_v37 = vpop.f32.mrb[1].mxu0 }
 0x113   :  { %v1137_v38 = vsub.f32 %v1038_v61, %v3157_v29  ;;  %2149 = vmatmul.mubr.f32.vlgmr.msra.gmra.mrb[2].mxu1 %v3157_v29 }
 0x114   :  { %2437 = vmatpush3.bf16.msra.mxu1 %v3032_v14  ;;  %2218 = vmatprep.mubr.msk.f32.mxu1 %vm2595_vm0, %v2596_v9 }
 0x115   :  { %v1138_v39 = vand.u32 4294901760, %v1137_v38  ;;  %2438 = vmatprep.subr.bf16.mxu1 %v2594_v4  ;;  %1698 = vperm.xlu0 %2539, %v2507_v24  }
 0x117   :  { %v1139_v41 = vsub.f32 %v1137_v38, %v1138_v39 }
 0x118   :  { %2440 = vmatpush3.bf16.msra.mxu1 %v3060_v20 }
 0x119   :  { %2441 = vmatprep.subr.bf16.mxu1 %v2594_v4  ;;  %v1140_v26 = vand.u32 4294901760, %v1139_v41 }
 0x11b   :  { %2114 = vmatmul.mubr.f32.vlgmr.msra.gmra.mrb[2].mxu0 %v1140_v26 }
 0x11c   :  { %2413 = vmatpush3.bf16.msra.mxu0 %v2412_v44  ;;  %2443 = vmatpush3.bf16.msra.mxu1 %v3079_v21 }
 0x11d   :  { %2414 = vmatprep.subr.bf16.mxu0 %v2594_v4  ;;  %2444 = vmatprep.subr.bf16.mxu1 %v2594_v4 }
 0x11e   :  { %2183 = vmatprep.mubr.msk.f32.mxu0 %vm2595_vm0, %v2596_v9 }
 0x120   :  { %2416 = vmatpush3.bf16.msra.mxu0 %v2415_v35  ;;  %2446 = vmatpush3.bf16.msra.mxu1 %v3094_v28 }
 0x121   :  { %2417 = vmatprep.subr.bf16.mxu0 %v2594_v4  ;;  %2447 = vmatprep.subr.bf16.mxu1 %v2594_v4 }
 0x124   :  { %2419 = vmatpush3.bf16.msra.mxu0 %v2418_v17  ;;  %2449 = vmatpush3.bf16.msra.mxu1 %v3103_v51 }
 0x125   :  { %2420 = vmatprep.subr.bf16.mxu0 %v2594_v4  ;;  %2450 = vmatprep.subr.bf16.mxu1 %v2594_v4 }
 0x128   :  { %2422 = vmatpush3.bf16.msra.mxu0 %v2421_v10  ;;  %2452 = vmatpush3.bf16.msra.mxu1 %v3132_v42 }
 0x129   :  { %2423 = vmatprep.subr.bf16.mxu0 %v2594_v4  ;;  %2453 = vmatprep.subr.bf16.mxu1 %v2594_v4 }
 0x12c   :  { %2425 = vmatpush3.bf16.msra.mxu0 %v2424_v59  ;;  %2455 = vmatpush3.bf16.msra.mxu1 %v3141_v60 }
 0x12d   :  { %2426 = vmatprep.subr.bf16.mxu0 %v2594_v4  ;;  %2456 = vmatprep.subr.bf16.mxu1 %v2594_v4 }
 0x130   :  { %2428 = vmatpush3.bf16.msra.mxu0 %v2427_v3  ;;  %2458 = vmatpush3.bf16.msra.mxu1 %v3145_v57 }
 0x131   :  { %2429 = vmatprep.subr.bf16.mxu0 %v2594_v4  ;;  %2483 = vmatprep.subr.bf16.mxu1 %v2594_v4 }
 0x133   :  { %2219 = vmatmul.mubr.f32.vlgmr.msra.gmra.mrb[4].mxu1 %v1138_v39 }
 0x134   :  { %2431 = vmatpush3.bf16.msra.mxu0 %v2430_v5  ;;  %2485 = vmatpush3.bf16.msra.mxu1 %v3032_v14  ;;  %v2463_v14 = vpack.c.bf16 %v1170_v25, %v1163_v19  ;;  %v41_v19 = vld [vmem:[%s3304_s3] sm:$0xff]  ;;  %v1722_v25 = vshrl.u32 %v1721_v36, 7 }
 0x135   :  { %2432 = vmatprep.subr.bf16.mxu0 %v2594_v4  ;;  %2486 = vmatprep.subr.bf16.mxu1 %v2594_v4 }
 0x136   :  { %2288 = vmatprep.mubr.msk.f32.mxu1 %vm2595_vm0, %v2596_v9  ;;  %vm1726_vm2 = vcmp.lt.s32.totalorder %v1722_v25, 2 }
 0x137   :  { %v1727_v27 = vsel %vm1726_vm2, %v41_v19, 0.0 }
 0x138   :  { %2434 = vmatpush3.bf16.msra.mxu0 %v2433_v58  ;;  %2488 = vmatpush3.bf16.msra.mxu1 %v3060_v20  ;;  %v1733_v40 = vsel %vm1702_vm3, %v1727_v27, 0.0 }
 0x139   :  { %2459 = vmatprep.subr.bf16.mxu0 %v2594_v4  ;;  %2489 = vmatprep.subr.bf16.mxu1 %v2594_v4 }
 0x13a   :  { %1734 = vadd.xlane.f32.xlu0 %v1733_v40 }
 0x13b   :  { %2184 = vmatmul.mubr.f32.vlgmr.msra.gmra.mrb[4].mxu0 %v1137_v38 }
 0x13c   :  { %2461 = vmatpush3.bf16.msra.mxu0 %v2460_v6  ;;  %2491 = vmatpush3.bf16.msra.mxu1 %v3079_v21 }
 0x13d   :  { %2462 = vmatprep.subr.bf16.mxu0 %v2594_v4  ;;  %2492 = vmatprep.subr.bf16.mxu1 %v2594_v4 }
 0x13e   :  { %2253 = vmatprep.mubr.msk.f32.mxu0 %vm2595_vm0, %v2596_v9  ;;  %v2469_v9 = vpack.c.bf16 %v1198_v63, %v1191_v62 }
 0x140   :  { %2464 = vmatpush3.bf16.msra.mxu0 %v2463_v14  ;;  %2494 = vmatpush3.bf16.msra.mxu1 %v3094_v28 }
 0x141   :  { %2465 = vmatprep.subr.bf16.mxu0 %v2594_v4  ;;  %2495 = vmatprep.subr.bf16.mxu1 %v2594_v4 }
 0x144   :  { %2467 = vmatpush3.bf16.msra.mxu0 %v2466_v31  ;;  %2497 = vmatpush3.bf16.msra.mxu1 %v3103_v51 }
 0x145   :  { %2468 = vmatprep.subr.bf16.mxu0 %v2594_v4  ;;  %2498 = vmatprep.subr.bf16.mxu1 %v2594_v4 }
 0x148   :  { %2470 = vmatpush3.bf16.msra.mxu0 %v2469_v9  ;;  %2500 = vmatpush3.bf16.msra.mxu1 %v3132_v42 }
 0x149   :  { %2471 = vmatprep.subr.bf16.mxu0 %v2594_v4  ;;  %2501 = vmatprep.subr.bf16.mxu1 %v2594_v4 }
 0x14c   :  { %2473 = vmatpush3.bf16.msra.mxu0 %v2472_v32  ;;  %2503 = vmatpush3.bf16.msra.mxu1 %v3141_v60 }
 0x14d   :  { %2474 = vmatprep.subr.bf16.mxu0 %v2594_v4  ;;  %2504 = vmatprep.subr.bf16.mxu1 %v2594_v4 }
 0x150   :  { %2476 = vmatpush3.bf16.msra.mxu0 %v2475_v15  ;;  %2506 = vmatpush3.bf16.msra.mxu1 %v3145_v57 }
 0x151   :  { %2477 = vmatprep.subr.bf16.mxu0 %v2594_v4 }
 0x153   :  { %2289 = vmatmul.mubr.f32.vlgmr.msra.gmra.mrb[6].mxu1 %v3157_v29 }
 0x154   :  { %2479 = vmatpush3.bf16.msra.mxu0 %v2478_v16 }
 0x155   :  { %2480 = vmatprep.subr.bf16.mxu0 %v2594_v4 }
 0x158   :  { %2482 = vmatpush3.bf16.msra.mxu0 %v2481_v34 }
 0x15b   :  { %2254 = vmatmul.mubr.f32.vlgmr.msra.gmra.mrb[6].mxu0 %v3157_v29 }
 0x194   :  { %v1699_v20 = vpop.permute.xlu0 %1698 }
 0x1c7   :  { %v1735_v37 = vpop.xlane.xlu0 %1734 }
 0x1c8   :  { %vm1736_vm5 = vcmp.gt.f32.partialorder %v1735_v37, 0.0 }
 0x1c9   :  { %v1737_v38 = vsel %vm1736_vm5, %v1735_v37, 1.0 }
 0x1e6   :  { %v1293_v48 = vpop.f32.mrb[2].mxu1 }
 0x1e7   :  { %v2150_v49 = vpop.f32.mrb[3].mxu1 }
 0x1ee   :  { %v1142_v50 = vpop.f32.mrb[2].mxu0 }
 0x1ef   :  { %v1294_v4 = vadd.f32 %v1293_v48, %v1142_v50  ;;  %v2115_v52 = vpop.f32.mrb[3].mxu0 }
 0x206   :  { %v1486_v62 = vpop.f32.mrb[4].mxu1 }
 0x207   :  { %v2220_v63 = vpop.f32.mrb[5].mxu1 }
 0x20e   :  { %v1397_v0 = vpop.f32.mrb[4].mxu0 }
 0x20f   :  { %v1398_v1 = vadd.f32 %v1397_v0, %v1294_v4  ;;  %v2185_v43 = vpop.f32.mrb[5].mxu0 }
 0x211   :  { %v1487_v33 = vadd.f32 %v1486_v62, %v1398_v1 }
 0x226   :  { %v1692_v46 = vpop.f32.mrb[6].mxu1 }
 0x227   :  { %v2290_v47 = vpop.f32.mrb[7].mxu1 }
 0x22e   :  { %v1605_v7 = vpop.f32.mrb[6].mxu0 }
 0x22f   :  { %v1606_v8 = vadd.f32 %v1605_v7, %v1487_v33  ;;  %v2255_v12 = vpop.f32.mrb[7].mxu0 }
 0x231   :  { %v1693_v13 = vadd.f32 %v1692_v46, %v1606_v8 }
 0x233   :  { %v1701_v11 = vadd.f32 %v1699_v20, %v1693_v13 }
 0x235   :  { %v1707_v18 = vand.u32 2147483647, %v1701_v11  ;;  %1703 = vst.msk [vmem:[#allocation3] sm:$0xff] %vm1702_vm3, %v1701_v11  ;;  %v1704_v42 = vmax.f32 %v1701_v11, 0.0  ;;  %v1705_v60 = vmul.f32 %v1701_v11, %v40_v54 }
 0x237   :  { %v1708_v21 = vsub.f32 0.0, %v1707_v18  ;;  %v1706_v56 = vsub.f32 %v1704_v42, %v1705_v60 }
 0x239   :  { %v1709_v28 = vmul.f32 1.442695, %v1708_v21 }
 0x23b   :  { %2540 = vpow2.f32 %v1709_v28 }
 0x245   :  { %v2541_v51 = vpop.eup %2540 }
 0x246   :  { %v1711_v45 = vadd.f32 1.0, %v2541_v51  ;;  %v1714_v53 = vmul.f32 -0.5, %v2541_v51  ;;  %v1717_v57 = vand.u32 2147483647, %v2541_v51 }
 0x248   :  { %2542 = vlog2.f32 %v1711_v45  ;;  %v1715_v30 = vadd.f32 1.0, %v1714_v53  ;;  %vm1718_vm4 = vcmp.lt.f32.partialorder %v1717_v57, 0.0004427343 }
 0x249   :  { %2544 = vrcp.f32 %v1737_v38 }
 0x24a   :  { %v1716_v55 = vmul.f32 %v2541_v51, %v1715_v30 }
 0x252   :  { %v2543_v58 = vpop.eup %2542 }
 0x253   :  { %v1713_v22 = vmul.f32 0.6931472, %v2543_v58  ;;  %v2545_v39 = vpop.eup %2544 }
 0x255   :  { %v1719_v61 = vsel %vm1718_vm4, %v1716_v55, %v1713_v22 }
 0x256   :  { %v1720_v2 = vadd.f32 %v1719_v61, %v1706_v56 }
 0x258   :  { %v1728_v29 = vsel %vm1726_vm2, %v1720_v2, 0.0 }
 0x259   :  { %v1729_v23 = vmul.f32 %v1728_v29, %v1727_v27 }
 0x25b   :  { %v1730_v24 = vsel %vm1702_vm3, %v1729_v23, 0.0 }
 0x25c   :  { %1731 = vadd.xlane.f32.xlu1 %v1730_v24 }
 0x2e9   :  { %v1732_v41 = vpop.xlane.xlu1 %1731 }
 0x2ea   :  { %v1739_v44 = vmul.f32 %v2545_v39, %v1732_v41 }
 0x2ec   :  { %v1740_v26 = vsel %vm1736_vm5, %v1739_v44, 0.0 }
 0x2ed   :  { %v1742_v35 = vsel %vm1741_vm6, %v1740_v26, 0.0 }
 0x2ee   :  { %1743 = vadd.xlane.f32.xlu1 %v1742_v35 }
 0x37b   :  { %v1744_v17 = vpop.xlane.xlu1 %1743 }
 0x37c   :  { %v1745_v10 = vrot.slane %v1744_v17, 4 }
 0x37e   :  { %v1746_v59 = vadd.f32 %v1745_v10, %v1744_v17 }
 0x380   :  { %v1747_v3 = vrot.slane %v1746_v59, 2 }
 0x382   :  { %v1748_v5 = vadd.f32 %v1747_v3, %v1746_v59 }
 0x384   :  { %v1749_v6 = vrot.slane %v1748_v5, 1 }
 0x386   :  { %v1750_v14 = vadd.f32 %v1749_v6, %v1748_v5 }
 0x388   :  { %2529 = vpush %v1750_v14 }
 0x3b9   :  { %s2530_s2 = spop %2529 }
 0x3ba   :  { %v1752_v31 = vstv %s2530_s2 }
 0x3bb   :  { %1754 = vst.msk [vmem:[#allocation5] sm:$0x1] %vm1753_vm7, %v1752_v31 }
 0x3bc   :  { %1759 = vsyncadd [#allocation4], 96  ;;  %s2598_s5 = smov [#allocation3]  }
 0x3bd   :  { %s1760_s21 = sshll.u32 %s2598_s5, 4  ;;  %s1761_s21 = int_to_ptr.vmem [resolvable:$true] %s1760_s21 }
 0x3be   :  { %s2546_s22 = scalar_lea.vmem %s1761_s21, 32  ;;  %s2550_s23 = scalar_lea.vmem %s1761_s21, 128 }
 0x3bf   :  { %p2547_p0 = scmp.ne.s32.totalorder %s1761_s21, %s2546_s22  ;;  %p2551_p1 = scmp.lt.s32.totalorder %s1761_s21, %s1761_s21 }
 0x3c0   :  { %p2552_p2 = scmp.lt.s32.totalorder %s2550_s23, %s2546_s22 }
 0x3c2   :  { %p2553_p3 = por %p2552_p2, %p2551_p1 }
 0x3c4   :  { %p2554_p4 = pnand %p2553_p3, %p2547_p0 }
 0x3c6   :  { %2557 = shalt.err (!%p2554_p4)
}
 0x3c7   :  { %s2558_s0 = scalar_lea.hbm %s3310_s9, 32 }
 0x3c8   :  { %p2559_p5 = scmp.ne.s32.totalorder %s3310_s9, %s2558_s0  ;;  %p2562_p6 = scmp.lt.u32.totalorder %s2558_s0, %s3310_s9 }
 0x3ca   :  { %p2564_p7 = pnand %p2562_p6, %p2559_p5 }
 0x3cc   :  { %2567 = shalt.err (!%p2564_p7)
}
 0x3cd   :  { %s2599_s29 = smov 32   ;;  %s2600_s4 = smov 2  }
 0x3ce   :  { %1766 = dma.vmem_to_hbm [thread:$0]  %s1761_s21, 32, %s3310_s9, [#allocation4], %s2599_s29, %s2599_s29, %s2600_s4  }
 0x3cf   :  { %s2601_s12 = smov [#allocation5]  }
 0x3d0   :  { %s1773_s13 = sshll.u32 %s2601_s12, 4  ;;  %s1774_s13 = int_to_ptr.vmem [resolvable:$true] %s1773_s13 }
 0x3d1   :  { %s2568_s14 = scalar_lea.vmem %s1774_s13, 16  ;;  %s2572_s15 = scalar_lea.vmem %s1774_s13, 32 }
 0x3d2   :  { %p2569_p8 = scmp.ne.s32.totalorder %s1774_s13, %s2568_s14  ;;  %p2573_p9 = scmp.lt.s32.totalorder %s1774_s13, %s1774_s13 }
 0x3d3   :  { %p2574_p10 = scmp.lt.s32.totalorder %s2572_s15, %s2568_s14 }
 0x3d5   :  { %p2575_p11 = por %p2574_p10, %p2573_p9 }
 0x3d7   :  { %p2576_p12 = pnand %p2575_p11, %p2569_p8 }
 0x3d9   :  { %2579 = shalt.err (!%p2576_p12)
}
 0x3da   :  { %s2580_s17 = scalar_lea.hbm %s3311_s10, 16 }
 0x3db   :  { %p2581_p13 = scmp.ne.s32.totalorder %s3311_s10, %s2580_s17  ;;  %p2584_p0 = scmp.lt.u32.totalorder %s2580_s17, %s3311_s10 }
 0x3dd   :  { %p2586_p1 = pnand %p2584_p0, %p2581_p13 }
 0x3df   :  { %2589 = shalt.err (!%p2586_p1)
}
 0x3e0   :  { %1776 = dma.vmem_to_hbm [thread:$0]  %s1774_s13, 16, %s3311_s10, [#allocation6]  }
 0x3e1   :  { %2590 = dma.done.wait [#allocation4], 128  }
 0x3e2   :  { %2591 = vsyncadd [#allocation4], 4294967168 }
 0x3e3   :  { %2592 = dma.done.wait [#allocation6], 16  }
 0x3e4   :  { %2593 = vsyncadd [#allocation6], 4294967280 }
 0x3e5   :  { %1783 = vsyncpa [#allocation4], 1 }
 0x3e6   :  { %1784 = vsyncpa [#allocation6], 1 }

</bundles_post_ra>
